<compile_context>
chip_gen: v7x
topology: tpu7x:2x2x1
jax: 0.10.0
libtpu: 0.0.40
codegen_flags: <defaults>
</compile_context>

<pallas_src>
import jax
import jax.numpy as jnp
from jax.experimental import pallas as pl
from jax.experimental.pallas import tpu as pltpu

SIGMA_DATA = 0.5  # EDM data std


def _edm_coefficients(sigmas):
    """Shared (wrapper + reference) EDM coefficient math, all f32, shape (B,)."""
    s = sigmas.astype(jnp.float32)
    sd2 = SIGMA_DATA * SIGMA_DATA
    denom = s * s + sd2
    c_in = jax.lax.rsqrt(denom)
    c_skip = sd2 / denom
    c_out = s * SIGMA_DATA * c_in
    c_noise = 0.25 * jnp.log(s)
    loss_w = denom / jnp.square(s * SIGMA_DATA)
    return s, c_in, c_skip, c_out, c_noise, loss_w


def _pick_sublane_factor(C, HW):
    """Channel->sublane flatten factor r so S = C*r fills bf16 (16) / f32 (8) sublanes."""
    for S in (16, 8):
        if S > C and S % C == 0 and HW % (S // C) == 0:
            return S // C
    return 1


def _pick_m_tile(M, max_lanes):
    """Largest multiple-of-128 divisor of M that is <= max_lanes (0 if none)."""
    if M % 128 != 0:
        return 0
    t = (min(M, max_lanes) // 128) * 128
    while t >= 128:
        if M % t == 0:
            return t
        t -= 128
    return 0


def diffusion_loss_kernel(coef_ref, x_ref, noise_ref, a_ref, cb_ref, out_ref):
    # coef_ref : (2*B,) f32 in SMEM, flat [sigma_b, loss_scale_b] pairs (no 128-lane padding)
    # x_ref / noise_ref : (1, S, T) bf16/f32 VMEM tiles (channels flattened into sublanes)
    # a_ref  : (1, S, S) f32  folded per-batch operator  c_skip*I + c_out*c_in*kron(W^T, I_r)
    # cb_ref : (1, S, 1) f32  folded per-batch bias      c_out*c_noise*repeat(b, r)
    # out_ref: (1, 1, 128) f32 lane-dense block, resident across the M ("arbitrary") axis
    bi = pl.program_id(0)
    mi = pl.program_id(1)
    n_m = pl.num_programs(1)

    sig = coef_ref[2 * bi]

    x = x_ref[0].astype(jnp.float32)           # (S, T) lane-dense, sublane-dense
    noise = noise_ref[0].astype(jnp.float32)   # (S, T)

    # x_noisy = x + sigmas_padded * noise   (single fused VPU pass, f32 math)
    x_noisy = x + sig * noise

    # x_denoised = A_b @ x_noisy + c_b   (c_skip / c_out / c_in / c_noise all pre-folded;
    # clip() is identity at dynamic_threshold = 0)
    pred = jnp.dot(a_ref[0], x_noisy, preferred_element_type=jnp.float32)   # MXU
    diff = pred + cb_ref[0] - x                # = x_denoised - x, bias broadcast over lanes

    @pl.when(mi == 0)
    def _init():
        out_ref[...] = jnp.zeros_like(out_ref)

    # NOTE: a (S,128) partial-sum accumulator would drop the per-step cross-lane reduce, but
    # producing it needs a lane-axis reshape (= relayout); the XLU slot is otherwise idle, so
    # the plain reduce stays and only the loss-weight scaling is deferred to the last tile.
    dsq = diff * diff
    out_ref[...] += jnp.sum(dsq)

    @pl.when(mi == n_m - 1)
    def _finalize():
        out_ref[...] *= coef_ref[2 * bi + 1]   # loss_weight(sigma_b) / (C*H*W)


def diffusion_forward(x_nchw, sigmas, noise_nchw, w, b, *,
                      tile_bytes_target=2 * 1024 * 1024,
                      tile_bytes_cap=6 * 1024 * 1024):
    """Pallas wrapper.

    x_nchw, noise_nchw: (B, C, H, W) (bf16 recommended; kernel math is f32);
    sigmas: (B,); w: (C, C) net weight; b: (C,) net bias.  Returns per-batch losses (B,).
    """
    B, C, H, W = x_nchw.shape
    HW = H * W
    itemsize = jnp.dtype(x_nchw.dtype).itemsize

    # --- channel -> sublane flatten (free, contiguous reshape; no HBM transpose) ----------
    r = _pick_sublane_factor(C, HW)
    S = C * r
    M = (C * HW) // S

    x = x_nchw.reshape(B, S, M)
    noise = noise_nchw.reshape(B, S, M)

    # --- EDM coefficients, folded into one per-batch operator -----------------------------
    s, c_in, c_skip, c_out, c_noise, loss_w = _edm_coefficients(sigmas)
    scale = loss_w / jnp.float32(C * HW)

    w_t = jnp.asarray(w, jnp.float32).T                       # (C, C): channel-first 1x1 conv
    wk = jnp.kron(w_t, jnp.eye(r, dtype=jnp.float32))         # (S, S) sublane-flattened weight
    bk = jnp.repeat(jnp.asarray(b, jnp.float32), r)           # (S,)

    eye_s = jnp.eye(S, dtype=jnp.float32)
    a_mat = (c_skip[:, None, None] * eye_s[None]
             + (c_out * c_in)[:, None, None] * wk[None])          # (B, S, S)
    c_vec = (c_out * c_noise)[:, None, None] * bk[None, :, None]  # (B, S, 1)

    coef = jnp.stack([s, scale], axis=1).reshape(-1)               # (2B,) flat SMEM table

    # --- M-axis tiling: ~2 MiB per input per grid step, byte-capped for v7x VMEM ----------
    lane_target = max(128, (tile_bytes_target // (S * itemsize)) // 128 * 128)
    lane_cap = max(128, (tile_bytes_cap // (S * itemsize)) // 128 * 128)

    pad = 0
    if M * S * itemsize <= tile_bytes_cap:
        thw = _pick_m_tile(M, lane_target) or M      # small / awkward M: whole-M tile is safe
    else:
        thw = _pick_m_tile(M, lane_target) or _pick_m_tile(M, lane_cap)
        if thw == 0:
            # Awkwardly-factored large M: pad to a multiple of a capped tile.  Padded columns
            # contribute exactly |c_b|^2 each to the squared error; subtract analytically below.
            thw = lane_target
            m_pad = -(-M // thw) * thw
            pad = m_pad - M
            x = jnp.pad(x, ((0, 0), (0, 0), (0, pad)))
            noise = jnp.pad(noise, ((0, 0), (0, 0), (0, pad)))
            M = m_pad
    n_m = M // thw

    # 2 activation inputs x double buffer x tile, plus tiny weights/coeffs/accumulator.
    tile_in_bytes = S * thw * itemsize
    vmem_limit = int(min(max(2 * (4 * tile_in_bytes + (2 << 20)), 32 << 20), 56 << 20))

    out = pl.pallas_call(
        diffusion_loss_kernel,
        out_shape=jax.ShapeDtypeStruct((B, 1, 128), jnp.float32),
        grid=(B, n_m),
        in_specs=[
            # flat sigma/scale table: whole array in SMEM (scalar-unit reads, no VMEM DMA)
            pl.BlockSpec(memory_space=pltpu.MemorySpace.SMEM),
            pl.BlockSpec((1, S, thw), lambda bi, mi: (bi, 0, mi)),   # x tile
            pl.BlockSpec((1, S, thw), lambda bi, mi: (bi, 0, mi)),   # noise tile
            pl.BlockSpec((1, S, S), lambda bi, mi: (bi, 0, 0)),      # A_b (per batch, tiny)
            pl.BlockSpec((1, S, 1), lambda bi, mi: (bi, 0, 0)),      # c_b (per batch, tiny)
        ],
        # lane-dense per-batch output slab, resident across the M reduction axis
        out_specs=pl.BlockSpec((1, 1, 128), lambda bi, mi: (bi, 0, 0)),
        compiler_params=pltpu.CompilerParams(
            dimension_semantics=("parallel", "arbitrary"),
            vmem_limit_bytes=vmem_limit),
    )(coef, x, noise, a_mat, c_vec)

    losses = out[:, 0, 0]                           # (B,) per-batch losses
    if pad:
        # Remove the exact contribution of the zero-padded columns: diff there == c_b.
        losses = losses - (c_out * c_noise) ** 2 * jnp.sum(bk * bk) * jnp.float32(pad) * scale
    return losses


def reference_forward(x_nchw, sigmas, noise_nchw, w, b):
    """Pure-JAX reference mirroring the PyTorch module (same synthetic net, same dtype path)."""
    B, C, H, W = x_nchw.shape
    x = x_nchw.reshape(B, C, H * W).astype(jnp.float32)
    noise = noise_nchw.reshape(B, C, H * W).astype(jnp.float32)
    s, c_in, c_skip, c_out, c_noise, loss_w = [
        v.reshape(B, 1, 1) for v in _edm_coefficients(sigmas)
    ]
    w_f = jnp.asarray(w, jnp.float32)
    b_f = jnp.asarray(b, jnp.float32).reshape(1, C, 1)

    x_noisy = x + s * noise
    # channel-first 1x1 conv: x_pred[b,c,p] = sum_d W[d,c] * (c_in*x_noisy)[b,d,p] + c_noise*b[c]
    x_pred = jnp.einsum("dc,bdp->bcp", w_f, c_in * x_noisy) + c_noise * b_f
    x_denoised = c_skip * x_noisy + c_out * x_pred
    losses = jnp.sum((x_denoised - x) ** 2, axis=(1, 2))
    return losses * loss_w[:, 0, 0] / float(C * H * W)


if __name__ == "__main__":
    B, C, H, W = 2, 4, 16, 16
    key = jax.random.PRNGKey(0)
    kx, kn, ks, kw, kb = jax.random.split(key, 5)

    x = jax.random.normal(kx, (B, C, H, W), dtype=jnp.float32)
    noise = jax.random.normal(kn, (B, C, H, W), dtype=jnp.float32)   # torch.randn_like(x)
    sigmas = jax.random.uniform(ks, (B,), minval=0.1, maxval=1.0, dtype=jnp.float32)
    w_net = 0.1 * jax.random.normal(kw, (C, C), dtype=jnp.float32)   # synthetic net weight
    b_net = 0.1 * jax.random.normal(kb, (C,), dtype=jnp.float32)     # synthetic net bias

    # HBM-bandwidth-bound kernel: feed activations as bf16 (compute stays f32 in-kernel).
    x_bf = x.astype(jnp.bfloat16)
    noise_bf = noise.astype(jnp.bfloat16)

    losses = diffusion_forward(x_bf, sigmas, noise_bf, w_net, b_net)
    losses = jax.block_until_ready(losses)

    ref = reference_forward(x_bf, sigmas, noise_bf, w_net, b_net)
    assert losses.shape == (B,)
    assert jnp.allclose(losses, ref, rtol=5e-4, atol=1e-5), (losses, ref)

    print("KERNEL_OK")
</pallas_src>

<mosaic_0001>
module attributes {stable_mosaic.version = 11 : i64} {
  func.func @diffusion_loss_kernel(%arg0: i32, %arg1: i32, %arg2: memref<4xf32, #tpu.memory_space<smem>>, %arg3: memref<1x16x64xbf16, #tpu.memory_space<vmem>>, %arg4: memref<1x16x64xbf16, #tpu.memory_space<vmem>>, %arg5: memref<1x16x16xf32, #tpu.memory_space<vmem>>, %arg6: memref<1x16x1xf32, #tpu.memory_space<vmem>>, %arg7: memref<1x1x128xf32, #tpu.memory_space<vmem>>) attributes {dimension_semantics = [#tpu.dimension_semantics<parallel>, #tpu.dimension_semantics<arbitrary>], iteration_bounds = array<i64: 2, 1>, scalar_prefetch = 0 : i64, scratch_operands = 0 : i64, tpu.core_type = #tpu.core_type<tc>, window_params = [{transform_indices = @transform_0, window_bounds = array<i64: 4>}, {transform_indices = @transform_1, window_bounds = array<i64: 1, 16, 64>}, {transform_indices = @transform_2, window_bounds = array<i64: 1, 16, 64>}, {transform_indices = @transform_3, window_bounds = array<i64: 1, 16, 16>}, {transform_indices = @transform_4, window_bounds = array<i64: 1, 16, 1>}, {transform_indices = @transform_5, window_bounds = array<i64: 1, 1, 128>}]} {
    %c2_i32 = arith.constant 2 : i32
    %0 = arith.muli %c2_i32, %arg0 : i32
    %1 = arith.index_cast %0 : i32 to index
    %2 = memref.load %arg2[%1] : memref<4xf32, #tpu.memory_space<smem>>
    %c0 = arith.constant 0 : index
    %c0_0 = arith.constant 0 : index
    %c0_1 = arith.constant 0 : index
    %3 = vector.load %arg3[%c0, %c0_0, %c0_1] : memref<1x16x64xbf16, #tpu.memory_space<vmem>>, vector<1x16x64xbf16>
    %4 = vector.shape_cast %3 : vector<1x16x64xbf16> to vector<16x64xbf16>
    %5 = arith.extf %4 : vector<16x64xbf16> to vector<16x64xf32>
    %c0_2 = arith.constant 0 : index
    %c0_3 = arith.constant 0 : index
    %c0_4 = arith.constant 0 : index
    %6 = vector.load %arg4[%c0_2, %c0_3, %c0_4] : memref<1x16x64xbf16, #tpu.memory_space<vmem>>, vector<1x16x64xbf16>
    %7 = vector.shape_cast %6 : vector<1x16x64xbf16> to vector<16x64xbf16>
    %8 = arith.extf %7 : vector<16x64xbf16> to vector<16x64xf32>
    %9 = vector.broadcast %2 : f32 to vector<16x64xf32>
    %10 = arith.mulf %9, %8 : vector<16x64xf32>
    %11 = arith.addf %5, %10 : vector<16x64xf32>
    %c0_5 = arith.constant 0 : index
    %c0_6 = arith.constant 0 : index
    %c0_7 = arith.constant 0 : index
    %12 = vector.load %arg5[%c0_5, %c0_6, %c0_7] : memref<1x16x16xf32, #tpu.memory_space<vmem>>, vector<1x16x16xf32>
    %13 = vector.shape_cast %12 : vector<1x16x16xf32> to vector<16x16xf32>
    %cst = arith.constant dense<0.000000e+00> : vector<16x64xf32>
    %14 = tpu.matmul %13, %11, %cst {dimension_numbers = #tpu.dot_dimension_numbers<[1], [0], [0], [1], [0, 0, 1, 1], [], []>} : vector<16x16xf32>, vector<16x64xf32>, vector<16x64xf32> -> vector<16x64xf32>
    %c0_8 = arith.constant 0 : index
    %c0_9 = arith.constant 0 : index
    %c0_10 = arith.constant 0 : index
    %15 = vector.load %arg6[%c0_8, %c0_9, %c0_10] : memref<1x16x1xf32, #tpu.memory_space<vmem>>, vector<1x16x1xf32>
    %16 = vector.shape_cast %15 : vector<1x16x1xf32> to vector<16x1xf32>
    %17 = vector.broadcast %16 : vector<16x1xf32> to vector<16x64xf32>
    %18 = arith.addf %14, %17 : vector<16x64xf32>
    %19 = arith.subf %18, %5 : vector<16x64xf32>
    %c0_i32 = arith.constant 0 : i32
    %20 = arith.cmpi eq, %arg1, %c0_i32 : i32
    %21 = arith.extui %20 : i1 to i32
    %c0_i32_11 = arith.constant 0 : i32
    %22 = arith.cmpi ne, %21, %c0_i32_11 : i32
    scf.if %22 {
      %cst_21 = arith.constant 0.000000e+00 : f32
      %35 = vector.broadcast %cst_21 : f32 to vector<1x1x128xf32>
      %c0_22 = arith.constant 0 : index
      %c0_23 = arith.constant 0 : index
      %c0_24 = arith.constant 0 : index
      %36 = vector.load %arg7[%c0_22, %c0_23, %c0_24] : memref<1x1x128xf32, #tpu.memory_space<vmem>>, vector<1x1x128xf32>
      tpu.vector_store %arg7[%c0_22, %c0_23, %c0_24], %35 {strides = array<i32>} : memref<1x1x128xf32, #tpu.memory_space<vmem>>, vector<1x1x128xf32>,
    } else {
    }
    %23 = arith.mulf %19, %19 : vector<16x64xf32>
    %c0_12 = arith.constant 0 : index
    %c0_13 = arith.constant 0 : index
    %c0_14 = arith.constant 0 : index
    %24 = vector.load %arg7[%c0_12, %c0_13, %c0_14] : memref<1x1x128xf32, #tpu.memory_space<vmem>>, vector<1x1x128xf32>
    %25 = vector.shape_cast %23 : vector<16x64xf32> to vector<1x16x64xf32>
    %cst_15 = arith.constant dense<0.000000e+00> : vector<1xf32>
    %26 = vector.multi_reduction <add>, %25, %cst_15 [1, 2] : vector<1x16x64xf32> to vector<1xf32>
    %27 = vector.shape_cast %26 : vector<1xf32> to vector<1x1x1xf32>
    %28 = vector.extract %27[0, 0, 0] : f32 from vector<1x1x1xf32>
    %29 = vector.broadcast %28 : f32 to vector<1x1x128xf32>
    %30 = arith.addf %24, %29 : vector<1x1x128xf32>
    %c0_16 = arith.constant 0 : index
    %c0_17 = arith.constant 0 : index
    %c0_18 = arith.constant 0 : index
    %31 = vector.load %arg7[%c0_16, %c0_17, %c0_18] : memref<1x1x128xf32, #tpu.memory_space<vmem>>, vector<1x1x128xf32>
    tpu.vector_store %arg7[%c0_16, %c0_17, %c0_18], %30 {strides = array<i32>} : memref<1x1x128xf32, #tpu.memory_space<vmem>>, vector<1x1x128xf32>,
    %c0_i32_19 = arith.constant 0 : i32
    %32 = arith.cmpi eq, %arg1, %c0_i32_19 : i32
    %33 = arith.extui %32 : i1 to i32
    %c0_i32_20 = arith.constant 0 : i32
    %34 = arith.cmpi ne, %33, %c0_i32_20 : i32
    scf.if %34 {
      %c0_21 = arith.constant 0 : index
      %c0_22 = arith.constant 0 : index
      %c0_23 = arith.constant 0 : index
      %35 = vector.load %arg7[%c0_21, %c0_22, %c0_23] : memref<1x1x128xf32, #tpu.memory_space<vmem>>, vector<1x1x128xf32>
      %c2_i32_24 = arith.constant 2 : i32
      %36 = arith.muli %c2_i32_24, %arg0 : i32
      %c1_i32 = arith.constant 1 : i32
      %37 = arith.addi %36, %c1_i32 : i32
      %38 = arith.index_cast %37 : i32 to index
      %39 = memref.load %arg2[%38] : memref<4xf32, #tpu.memory_space<smem>>
      %40 = vector.broadcast %39 : f32 to vector<1x1x128xf32>
      %41 = arith.mulf %35, %40 : vector<1x1x128xf32>
      %c0_25 = arith.constant 0 : index
      %c0_26 = arith.constant 0 : index
      %c0_27 = arith.constant 0 : index
      %42 = vector.load %arg7[%c0_25, %c0_26, %c0_27] : memref<1x1x128xf32, #tpu.memory_space<vmem>>, vector<1x1x128xf32>
      tpu.vector_store %arg7[%c0_25, %c0_26, %c0_27], %41 {strides = array<i32>} : memref<1x1x128xf32, #tpu.memory_space<vmem>>, vector<1x1x128xf32>,
    } else {
    }
    return
  }
  func.func @transform_0(%arg0: i32, %arg1: i32) -> i32 {
    %c0_i32 = arith.constant 0 : i32
    %c0_i32_0 = arith.constant 0 : i32
    return %c0_i32 : i32
  }
  func.func @transform_1(%arg0: i32, %arg1: i32) -> (i32, i32, i32) {
    %c0_i32 = arith.constant 0 : i32
    %c0_i32_0 = arith.constant 0 : i32
    return %arg0, %c0_i32, %arg1 : i32, i32, i32
  }
  func.func @transform_2(%arg0: i32, %arg1: i32) -> (i32, i32, i32) {
    %c0_i32 = arith.constant 0 : i32
    %c0_i32_0 = arith.constant 0 : i32
    return %arg0, %c0_i32, %arg1 : i32, i32, i32
  }
  func.func @transform_3(%arg0: i32, %arg1: i32) -> (i32, i32, i32) {
    %c0_i32 = arith.constant 0 : i32
    %c0_i32_0 = arith.constant 0 : i32
    %c0_i32_1 = arith.constant 0 : i32
    return %arg0, %c0_i32, %c0_i32_0 : i32, i32, i32
  }
  func.func @transform_4(%arg0: i32, %arg1: i32) -> (i32, i32, i32) {
    %c0_i32 = arith.constant 0 : i32
    %c0_i32_0 = arith.constant 0 : i32
    %c0_i32_1 = arith.constant 0 : i32
    return %arg0, %c0_i32, %c0_i32_0 : i32, i32, i32
  }
  func.func @transform_5(%arg0: i32, %arg1: i32) -> (i32, i32, i32) {
    %c0_i32 = arith.constant 0 : i32
    %c0_i32_0 = arith.constant 0 : i32
    %c0_i32_1 = arith.constant 0 : i32
    return %arg0, %c0_i32, %c0_i32_0 : i32, i32, i32
  }
}

</mosaic_0001>

<bundles_post_ra>
// kernel: tpu_custom_call.1
= control target key start
LH: loop header
LB: loop body
LE: loop exit
PB: predicated region body
PF: predicated region fallthrough
CT: control target
= control target key end

     0   :  { %s1273_s0 = inlined_call_operand.vmem [shape: f32[4], index: 0, kind: input, shape index: {}]   ;;  %s1274_s1 = inlined_call_operand.hbm [shape: bf16[2,16,64], index: 1, kind: input, shape index: {}]   ;;  %s1275_s2 = inlined_call_operand.hbm [shape: bf16[2,16,64], index: 2, kind: input, shape index: {}]   ;;  %s1276_s3 = inlined_call_operand.vmem [shape: f32[2,16,16], index: 3, kind: input, shape index: {}]   ;;  %s1277_s4 = inlined_call_operand.vmem [shape: f32[2,16,1], index: 4, kind: input, shape index: {}]   ;;  %s1278_s5 = inlined_call_operand.hbm [shape: f32[2,1,128], index: 5, kind: output, shape index: {}]  }
   0x1   :  { %1286 = sst [smem:[#allocation16_spill]] %s1273_s0 }
   0x2   :  { %1287 = sst [smem:[#allocation17_spill]] %s1274_s1 }
   0x3   :  { %10 = vsyncpa [#allocation5], 0 }
   0x4   :  { %11 = vsyncpa [#allocation3], 0 }
   0x5   :  { %13 = vsyncpa [#allocation3 + $0x1], 0 }
   0x6   :  { %14 = vsyncpa [#allocation8], 0 }
   0x7   :  { %16 = vsyncpa [#allocation8 + $0x1], 0 }
   0x8   :  { %17 = vsyncpa [#allocation4], 0 }
   0x9   :  { %19 = vsyncpa [#allocation4 + $0x1], 0  ;;  %s992_s18 = smov 0   ;;  %s994_s19 = smov 0  }
   0xa   :  { %s996_s20 = smov 0   ;;  %s998_s21 = smov 0  }
   0xb   :  { %s1000_s22 = smov 0   ;;  %s1002_s23 = smov 0  }
   0xc LB: > { %s650_s24 = sadd.s32 4294967295, %s952_s23   ;;  %s651_s25 = sadd.s32 4294967294, %s952_s23   ;;  %s952_s23 = sphi %s1002_s23, %s25_s23   ;;  %s948_s22 = sphi %s1000_s22, %s1314_s22   ;;  %s944_s21 = sphi %s998_s21, %s1313_s21   ;;  %s940_s20 = sphi %s996_s20, %s1312_s20   ;;  %s936_s19 = sphi %s994_s19, %s1311_s19   ;;  %s932_s18 = sphi %s992_s18, %s1310_s18  }
   0xd   : > { %s67_s26 = sadd.s32 1, %s940_s20  ;;  %p74_p0 = scmp.ne.s32.totalorder %s940_s20, %s936_s19 }
   0xe   : > { %p75_p1 = scmp.eq.s32.totalorder %s952_s23, 0  ;;  %p80_p2 = scmp.ne.s32.totalorder %s936_s19, %s932_s18 }
   0xf   : > { %p1030_p3 = scmp.eq.s32.totalorder %s650_s24, 0  ;;  %p184_p4 = scmp.eq.s32.totalorder %s650_s24, 1 }
  0x10   : > { %p1034_p5 = por %p75_p1, %p74_p0  ;;  %p190_p6 = scmp.eq.s32.totalorder %s651_s25, 1 }
  0x11   : > { %s1288_s27 = scalar_select %p1030_p3, 1, 0 }
  0x12   : > { %p1040_p7 = por %p1030_p3, %p80_p2  ;;  %p1044_p8 = por %p184_p4, %p74_p0 }
  0x13   : > { %p1048_p9 = por %p190_p6, %p80_p2  ;;  %p652_p10 = scmp.ge.s32.totalorder %s952_s23, 1 }
  0x14   : > { %s1290_s29 = scalar_select %p1040_p7, 1, 0 }
  0x15   : > { %s1291_s30 = scalar_select %p1044_p8, 1, 0 }
  0x16   : > { %s1292_s6 = scalar_select %p1048_p9, 1, 0 }
  0x17   : > { %p197_p11 = scmp.lt.s32.totalorder %s952_s23, 3  ;;  %s1293_s0 = sld [smem:[#allocation16_spill]] }
  0x18   : > { %p730_p0 = scmp.lt.s32.totalorder %s952_s23, 2  ;;  %s37_s13 = sadd.s32 1, %s948_s22 }
  0x19   : > { %p1057_p12 = pnand %p652_p10, %p197_p11  ;;  %p1078_p6 = scmp.ge.s32.totalorder %s37_s13, 2 }
  0x1a   : > { %p1067_p2 = pnand %p730_p0, %p1034_p5  ;;  %s1083_s15 = sand.u32 1, %s940_s20  }
  0x1b   : > { %p714_p1 = pneg %p1057_p12 }
  0x1d   : > { %s210_s9 = sshll.u32 %s1293_s0, 4  ;;  %p1073_p4 = pnand %p714_p1, %p1030_p3  ;;  %s211_s9 = int_to_ptr.vmem [resolvable:$true] %s210_s9 }
  0x1e   : > { %s787_s16 = scalar_lea.vmem %s211_s9, 16  ;;  %p795_p13 = scmp.lt.s32.totalorder %s211_s9, %s211_s9 }
  0x1f   : > { %p788_p10 = scmp.ne.s32.totalorder %s211_s9, %s787_s16  ;;  %p789_p5 = pneg %p1073_p4 }
  0x20   : > { %p796_p9 = scmp.lt.s32.totalorder %s787_s16, %s787_s16 }
  0x21   : > { %p790_p11 = pnand %p789_p5, %p788_p10 }
  0x22   : > { %p797_p1 = por %p796_p9, %p795_p13 }
  0x23   : > { %p791_p0 = pneg %p790_p11 }
  0x25   : > { %p798_p8 = pnand %p797_p1, %p791_p0 }
  0x27   : > { %801 = shalt.err (!%p798_p8)
}
  0x28   : > { %s954_s17 = smov [#allocation2]   ;;  %s1316_s13 = smov (%p1078_p6, %s37_s13), 0 }
  0x29   : > { %717 = dma.vmem_to_smem (!%p1073_p4), %s211_s9, 16, %s954_s17, [#allocation5]  }
  0x2a   : > { %1298 = sst [smem:[#allocation14_spill]] %s1316_s13  ;;  %s1281_s24 = sshll.u32 %s1083_s15, 3 }
  0x2b   : > { %s62_s25 = ssub.s32 %s948_s22, %s1316_s13  ;;  %s1280_s28 = sshll.u32 %s948_s22, 7 }
  0x2c   : > { %p65_p8 = scmp.eq.s32.totalorder %s62_s25, 0  ;;  %s1299_s1 = sld [smem:[#allocation17_spill]] }
  0x2d   : > { %s225_s9 = scalar_lea.vmem [#allocation6], %s1281_s24  ;;  %s222_s17 = scalar_lea.sflag [#allocation3], %s1083_s15 }
  0x2e   : > { %s233_s14 = sshll.u32 %s225_s9, 4  ;;  %p804_p13 = pneg %p1067_p2  ;;  %s1111_s14 = int_to_ptr.vmem [resolvable:$true] %s233_s14 }
  0x2f   : > { %s1109_s16 = scalar_select %p65_p8, %s940_s20, %s67_s26  }
  0x31   : > { %1300 = sst [smem:[#allocation15_spill]] %s1109_s16 }
  0x32   : > { %s1102_s12 = scalar_lea.hbm %s1299_s1, %s1280_s28  ;;  %s807_s28 = scalar_lea.hbm %s1299_s1, 256 }
  0x33   : > { %s802_s25 = scalar_lea.hbm %s1102_s12, 128  ;;  %p808_p10 = scmp.lt.u32.totalorder %s1102_s12, %s1299_s1 }
  0x34   : > { %p803_p9 = scmp.ne.s32.totalorder %s1102_s12, %s802_s25  ;;  %p809_p5 = scmp.lt.u32.totalorder %s807_s28, %s802_s25 }
  0x35   : > { %p811_p0 = scmp.lt.u32.totalorder %s802_s25, %s1102_s12 }
  0x36   : > { %p805_p4 = pnand %p804_p13, %p803_p9  ;;  %p810_p11 = por %p809_p5, %p808_p10 }
  0x38   : > { %p806_p6 = pneg %p805_p4  ;;  %p812_p1 = por %p811_p0, %p810_p11 }
  0x3a   : > { %p813_p8 = pnand %p812_p1, %p806_p6 }
  0x3c   : > { %816 = shalt.err (!%p813_p8)
}
  0x3d   : > { %s817_s26 = scalar_lea.vmem %s1111_s14, 128  ;;  %s955_s7 = smov [#allocation6]  }
  0x3e   : > { %p818_p9 = scmp.ne.s32.totalorder %s1111_s14, %s817_s26  ;;  %s822_s8 = sshll.u32 %s955_s7, 4  ;;  %s823_s8 = int_to_ptr.vmem [resolvable:$false] %s822_s8 }
  0x3f   : > { %s824_s24 = scalar_lea.vmem %s823_s8, 256  ;;  %p825_p3 = scmp.lt.s32.totalorder %s1111_s14, %s823_s8 }
  0x40   : > { %p820_p4 = pnand %p818_p9, %p804_p13  ;;  %p826_p10 = scmp.lt.s32.totalorder %s824_s24, %s817_s26 }
  0x42   : > { %p821_p7 = pneg %p820_p4  ;;  %p827_p5 = por %p826_p10, %p825_p3 }
  0x44   : > { %p828_p11 = pnand %p827_p5, %p821_p7 }
  0x46   : > { %831 = shalt.err (!%p828_p11)
}
  0x47   : > { %s956_s28 = smov 64   ;;  %s957_s25 = smov 4  }
  0x48   : > { %721 = dma.hbm_to_vmem [thread:$0]  (!%p1067_p2), %s1102_s12, 128, %s1111_s14, %s222_s17, %s956_s28, %s956_s28, %s957_s25  }
  0x49   : > { %s1301_s9 = sshll.u32 %s948_s22, 7  ;;  %s1302_s24 = sshll.u32 %s1083_s15, 3 }
  0x4a   : > { %s1149_s8 = scalar_lea.hbm %s1275_s2, %s1301_s9  ;;  %s247_s0 = scalar_lea.vmem [#allocation7], %s1302_s24 }
  0x4b   : > { %s255_s1 = sshll.u32 %s247_s0, 4  ;;  %s244_s13 = scalar_lea.sflag [#allocation8], %s1083_s15  ;;  %s1153_s1 = int_to_ptr.vmem [resolvable:$true] %s255_s1 }
  0x4c   : > { %s832_s16 = scalar_lea.hbm %s1149_s8, 128  ;;  %s837_s17 = scalar_lea.hbm %s1275_s2, 256 }
  0x4d   : > { %p833_p3 = scmp.ne.s32.totalorder %s1149_s8, %s832_s16  ;;  %p838_p0 = scmp.lt.u32.totalorder %s1149_s8, %s1275_s2 }
  0x4e   : > { %p839_p1 = scmp.lt.u32.totalorder %s837_s17, %s832_s16  ;;  %p841_p9 = scmp.lt.u32.totalorder %s832_s16, %s1149_s8 }
  0x4f   : > { %p835_p7 = pnand %p833_p3, %p804_p13 }
  0x50   : > { %p840_p8 = por %p839_p1, %p838_p0 }
  0x51   : > { %p836_p6 = pneg %p835_p7 }
  0x52   : > { %p842_p4 = por %p841_p9, %p840_p8 }
  0x54   : > { %p843_p10 = pnand %p842_p4, %p836_p6 }
  0x56   : > { %846 = shalt.err (!%p843_p10)
}
  0x57   : > { %s847_s0 = scalar_lea.vmem %s1153_s1, 128  ;;  %s958_s7 = smov [#allocation7]  }
  0x58   : > { %p848_p5 = scmp.ne.s32.totalorder %s1153_s1, %s847_s0  ;;  %s852_s24 = sshll.u32 %s958_s7, 4  ;;  %s853_s24 = int_to_ptr.vmem [resolvable:$false] %s852_s24 }
  0x59   : > { %s854_s12 = scalar_lea.vmem %s853_s24, 256  ;;  %p855_p7 = scmp.lt.s32.totalorder %s1153_s1, %s853_s24 }
  0x5a   : > { %p850_p11 = pnand %p848_p5, %p804_p13  ;;  %p856_p0 = scmp.lt.s32.totalorder %s854_s12, %s847_s0 }
  0x5c   : > { %p851_p3 = pneg %p850_p11  ;;  %p857_p1 = por %p856_p0, %p855_p7 }
  0x5e   : > { %p858_p8 = pnand %p857_p1, %p851_p3 }
  0x60   : > { %861 = shalt.err (!%p858_p8)
}
  0x61   : > { %724 = dma.hbm_to_vmem [thread:$0]  (!%p1067_p2), %s1149_s8, 128, %s1153_s1, %s244_s13, %s956_s28, %s956_s28, %s957_s25  }
  0x62   : > { %283 = sbr.rel (%p1057_p12) target bundleno = 585 (0x249), region = 40  ;;  %p1303_p13 = scmp.ne.s32.totalorder (!%p1057_p12), %s1288_s27, 0 }
  0x69   : > { %915 = dma.done.wait (%p1303_p13), [#allocation5], 16  }
  0x6a   : > { %917 = vsyncadd (%p1303_p13), [#allocation5], 4294967280  ;;  %s1191_s11 = sand.u32 1, %s936_s19   ;;  %p1304_p6 = scmp.ne.s32.totalorder %s1290_s29, 0 }
  0x6b   : > { %s663_s16 = sshll.u32 %s1191_s11, 3  ;;  %s290_s15 = scalar_lea.sflag [#allocation3], %s1191_s11 }
  0x6c   : > { %s293_s14 = scalar_lea.vmem [#allocation6], %s663_s16 }
  0x6d   : > { %919 = dma.done.wait (%p1304_p6), %s290_s15, 128  }
  0x6e   : > { %921 = vsyncadd (%p1304_p6), %s290_s15, 4294967168  ;;  %s299_s1 = scalar_lea.sflag [#allocation8], %s1191_s11  ;;  %s302_s10 = scalar_lea.vmem [#allocation7], %s663_s16 }
  0x6f   : > { %923 = dma.done.wait (%p1304_p6), %s299_s1, 128  }
  0x70   : > { %925 = vsyncadd (%p1304_p6), %s299_s1, 4294967168 }
  0x71   : > { %307 = sfence }
  0x72   : > { %s669_s27 = sshll.u32 %s944_s21, 1  ;;  %p344_p12 = scmp.lt.s32.totalorder %s944_s21, 1  ;;  %v684_v0 = vld [vmem:[%s302_s10] sm:$0xff]   ;;  %v959_v1 = vmov 0   ;;  %v680_v2 = vld [vmem:[%s293_s14] sm:$0xff]   ;;  %vm383_vm0 = vcmask 130048  }
  0x73   : > { %s355_s13 = sld [smem:[#allocation2 + %s669_s27]]  ;;  %786 = vset.pattern.permute.xlu0 %v959_v1  ;;  %v685_v3 = vunpack.c.l.bf16 %v684_v0  ;;  %v686_v4 = vunpack.c.h.bf16 %v684_v0  ;;  %v681_v5 = vunpack.c.l.bf16 %v680_v2  ;;  %v682_v6 = vunpack.c.h.bf16 %v680_v2  ;;  %s343_s7 = scalar_lea.vmem [#allocation9], %s1191_s11 }
  0x74   : > { %s345_s28 = scalar_select %p344_p12, %s944_s21, 1  ;;  %vm475_vm1 = vcmask 523264   ;;  %v960_v30 = vmov 0.0  }
  0x75   : > { %471 = vst [vmem:[%s343_s7] sm:$0x1] %v960_v30  ;;  %s495_s24 = sadd.s32 1, %s669_s27  ;;  %s672_s15 = sshll.u32 %s944_s21, 4 }
  0x76   : > { %s677_s25 = sshll.u32 %s345_s28, 4  ;;  %s496_s16 = sld [smem:[#allocation2 + %s495_s24]] }
  0x77   : > { %s348_s17 = scalar_lea.vmem %s1276_s3, %s677_s25  ;;  %s353_s0 = scalar_lea.vmem %s1277_s4, %s677_s25 }
  0x78   : > { %v369_v8 = vld [vmem:[%s348_s17] sm:$0xff]  ;;  %v372_v12 = vld [vmem:[%s353_s0 + $0x8] sm:$0xff]  ;;  %s513_s14 = sshll.u32 %s343_s7, 4  ;;  %s501_s27 = scalar_lea.sflag [#allocation4], %s1191_s11  ;;  %s1226_s14 = int_to_ptr.vmem [resolvable:$true] %s513_s14 }
  0x79   : > { %v364_v7 = vstv %s355_s13  ;;  %v371_v9 = vld [vmem:[%s353_s0] sm:$0xff]  ;;  %695 = vmatprep.mubr.msk.f32.mxu0 %vm383_vm0, %v369_v8  ;;  %v370_v16 = vld [vmem:[%s348_s17 + $0x8] sm:$0xff]  ;;  %s1224_s13 = scalar_lea.hbm %s1278_s5, %s672_s15  ;;  %s862_s28 = scalar_lea.vmem %s1226_s14, 16 }
  0x7a   : > { %v365_v10 = vmul.f32 %v685_v3, %v364_v7  ;;  %v366_v11 = vmul.f32 %v686_v4, %v364_v7  ;;  %375 = vperm.xlu0 %786, %v371_v9   ;;  %p863_p2 = scmp.ne.s32.totalorder %s1226_s14, %s862_s28  ;;  %p1305_p9 = scmp.ne.s32.totalorder %s1291_s30, 0 }
  0x7b   : > { %s961_s21 = smov [#allocation9]  }
  0x7c   : > { %v367_v13 = vadd.f32 %v681_v5, %v365_v10  ;;  %v368_v14 = vadd.f32 %v682_v6, %v366_v11  ;;  %v474_v38 = vld [vmem:[%s343_s7] sm:$0x1]  ;;  %v497_v41 = vstv %s496_s16  ;;  %p864_p4 = pnand %p863_p2, %p1305_p9  ;;  %s866_s25 = sshll.u32 %s961_s21, 4  ;;  %s867_s25 = int_to_ptr.vmem [resolvable:$false] %s866_s25 }
  0x7d   : > { %s868_s29 = scalar_lea.vmem %s867_s25, 32  ;;  %p869_p5 = scmp.lt.s32.totalorder %s1226_s14, %s867_s25 }
  0x7e   : > { %v698_v15 = vpack.c.bf16 %v368_v14, %v367_v13  ;;  %380 = vperm.xlu0 %786, %v372_v12   ;;  %p865_p10 = pneg %p864_p4  ;;  %p870_p11 = scmp.lt.s32.totalorder %s868_s29, %s862_s28 }
  0x80   : > { %699 = vmatprep.subr.bf16.mxu0 %v698_v15  ;;  %p871_p3 = por %p870_p11, %p869_p5 }
  0x81   : > { %701 = vmatpush3.bf16.msra.mxu0 %v698_v15 }
  0x82   : > { %p872_p7 = pnand %p871_p3, %p865_p10 }
  0x84   : > { %696 = vmatmul.mubr.msk.f32.vlgmr.msra.gmra.mrb[0].mxu0 %vm383_vm0, %v370_v16 }
  0xf9   : > { %v376_v17 = vpop.permute.xlu0 %375 }
  0xfd   : > { %v381_v18 = vpop.permute.xlu0 %380 }
 0x157   : > { %v697_v19 = vpop.f32.mrb[0].mxu0 }
 0x158   : > { %v462_v20 = vadd.f32 %v697_v19, %v381_v18  ;;  %v456_v21 = vpop.f32.mrb[1].mxu0 }
 0x159   : > { %v457_v22 = vadd.f32 %v456_v21, %v376_v17 }
 0x15a   : > { %v466_v23 = vsub.f32 %v462_v20, %v682_v6 }
 0x15b   : > { %v465_v24 = vsub.f32 %v457_v22, %v681_v5 }
 0x15c   : > { %v473_v25 = vmul.f32 %v466_v23, %v466_v23 }
 0x15d   : > { %v472_v26 = vmul.f32 %v465_v24, %v465_v24 }
 0x15e   : > { %v477_v27 = vsel %vm475_vm1, %v473_v25, 0.0 }
 0x15f   : > { %v476_v28 = vsel %vm475_vm1, %v472_v26, 0.0 }
 0x160   : > { %v478_v29 = vadd.f32 %v477_v27, %v476_v28 }
 0x162   : > { %479 = vadd.xlane.f32.xlu1 %v478_v29 }
 0x1ef   : > { %v480_v31 = vpop.xlane.xlu1 %479 }
 0x1f0   : > { %v481_v32 = vrot.slane %v480_v31, 4 }
 0x1f2   : > { %v482_v33 = vadd.f32 %v481_v32, %v480_v31 }
 0x1f4   : > { %v483_v34 = vrot.slane %v482_v33, 2 }
 0x1f6   : > { %v484_v35 = vadd.f32 %v483_v34, %v482_v33 }
 0x1f8   : > { %v485_v36 = vrot.slane %v484_v35, 1 }
 0x1fa   : > { %v486_v37 = vadd.f32 %v485_v36, %v484_v35 }
 0x1fc   : > { %702 = vpush %v486_v37 }
 0x22d   : > { %s703_s12 = spop %702 }
 0x22e   : > { %v488_v39 = vstv %s703_s12 }
 0x22f   : > { %v489_v40 = vadd.f32 %v488_v39, %v474_v38 }
 0x231   : > { %490 = vst [vmem:[%s343_s7] sm:$0x1] %v489_v40 }
 0x238   : > { %v494_v42 = vld [vmem:[%s343_s7] sm:$0x1] }
 0x239   : > { %v498_v43 = vmul.f32 %v497_v41, %v494_v42 }
 0x23b   : > { %499 = vst [vmem:[%s343_s7] sm:$0x1] %v498_v43 }
 0x23c   : > { %875 = shalt.err (!%p872_p7)
}
 0x23d   : > { %s876_s11 = scalar_lea.hbm %s1224_s13, 16  ;;  %s880_s9 = scalar_lea.hbm %s1278_s5, 32 }
 0x23e   : > { %p877_p0 = scmp.ne.s32.totalorder %s1224_s13, %s876_s11  ;;  %p881_p13 = scmp.lt.u32.totalorder %s1224_s13, %s1278_s5 }
 0x23f   : > { %p882_p6 = scmp.lt.u32.totalorder %s880_s9, %s876_s11  ;;  %p884_p2 = scmp.lt.u32.totalorder %s876_s11, %s1224_s13 }
 0x240   : > { %p878_p1 = pnand %p877_p0, %p1305_p9 }
 0x241   : > { %p883_p12 = por %p882_p6, %p881_p13 }
 0x242   : > { %p879_p8 = pneg %p878_p1 }
 0x243   : > { %p885_p4 = por %p884_p2, %p883_p12 }
 0x245   : > { %p886_p10 = pnand %p885_p4, %p879_p8 }
 0x247   : > { %889 = shalt.err (!%p886_p10)
}
 0x248   : > { %712 = dma.vmem_to_hbm [thread:$0]  (%p1305_p9), %s1226_s14, 16, %s1224_s13, %s501_s27  }
 0x249 PF: > { %s525_s7 = sand.u32 1, %s932_s18   ;;  %p1306_p5 = scmp.ne.s32.totalorder %s1292_s6, 0 }
 0x24a   : > { %p1307_p11 = scmp.ge.s32.totalorder %s952_s23, 2  ;;  %s526_s24 = scalar_lea.sflag [#allocation4], %s525_s7 }
 0x24c   : > { %p726_p3 = pnand %p1307_p11, %p1306_p5 }
 0x24e   : > { %927 = dma.done.wait (!%p726_p3), %s526_s24, 16  }
 0x24f   : > { %929 = vsyncadd (!%p726_p3), %s526_s24, 4294967280  ;;  %s25_s23 = sadd.s32 1, %s952_s23   ;;  %s1308_s30 = sld [smem:[#allocation15_spill]] }
 0x250   : > { %p22_p7 = scmp.ge.s32.totalorder %s25_s23, 4   ;;  %s1309_s12 = sld [smem:[#allocation14_spill]] }
 0x251   : > { %s1310_s18 = smov %s936_s19  ;;  %s1311_s19 = smov %s940_s20 }
 0x252   : > { %s1313_s21 = smov %s948_s22  ;;  %24 = sbr.rel (!%p22_p7) target bundleno = 12 (0xc), region = 117 }
 0x255   : > { %s1312_s20 = smov %s1308_s30 }
 0x256   : > { %s1314_s22 = smov %s1309_s12 }
 0x259   :  { %530 = vsyncpa [#allocation3], 1 }
 0x25a   :  { %532 = vsyncpa [#allocation3 + $0x1], 1 }
 0x25b   :  { %533 = vsyncpa [#allocation8], 1 }
 0x25c   :  { %535 = vsyncpa [#allocation8 + $0x1], 1 }
 0x25d   :  { %536 = vsyncpa [#allocation4], 1 }
 0x25e   :  { %538 = vsyncpa [#allocation4 + $0x1], 1 }
 0x25f   :  { %539 = vsyncpa [#allocation5], 1 }
 0x260   :  { %541 = vsyncpa [#allocation5 + $0x1], 1 }

</bundles_post_ra>
